<compile_context>
chip_gen: v7x
topology: tpu7x:2x2x1
jax: 0.10.0
libtpu: 0.0.40
codegen_flags: <defaults>
</compile_context>

<pallas_src>
import functools

import jax
import jax.numpy as jnp
from jax.experimental import pallas as pl
from jax.experimental.pallas import tpu as pltpu

NUM_ACTIONS = 9        # true output width (pre-padding)
HIDDEN = 400           # true hidden width (multiple of 16 -> no contraction padding needed)
OUT_PAD = 128          # lane-dense padded output width
TK = 80                # layer-2 contraction tile (divides 400, multiple of 16)
KSTEPS = HIDDEN // TK  # 5 pipelined K steps


def _actionnet_kernel(g_ref, s_ref, w1g_ref, w1s_ref, b1_ref,
                      w2_ref, b2_ref, w3_ref, b3_ref,
                      prob_ref, z_ref,
                      h1_scr, acc_scr,
                      *, batch):
    k = pl.program_id(0)

    # ---- k == 0: Layer 1 Linear(6 -> 400) + ReLU on the VPU; stash bf16 chunks of h1 ----
    @pl.when(k == 0)
    def _():
        g = g_ref[...]                                    # (Bp, NG) f32
        s = s_ref[...]                                    # (Bp, NS) f32
        # Two independent partial chains shorten the serial FMA dependency.
        hg = g[:, 0:1] * w1g_ref[0:1, :]
        for i in range(1, g.shape[1]):
            hg = hg + g[:, i:i + 1] * w1g_ref[i:i + 1, :]
        hs = s[:, 0:1] * w1s_ref[0:1, :]
        for i in range(1, s.shape[1]):
            hs = hs + s[:, i:i + 1] * w1s_ref[i:i + 1, :]
        h1 = jnp.maximum(hg + hs + b1_ref[...], 0.0)      # (Bp, HIDDEN) f32
        for i in range(KSTEPS):                           # static lane slices only
            h1_scr[i] = h1[:, i * TK:(i + 1) * TK].astype(jnp.bfloat16)
        acc_scr[...] = jnp.zeros_like(acc_scr)

    # ---- every step: one K-chunk of Layer 2 (bf16 MXU matmul, f32 accumulate) ----
    acc_scr[...] += jnp.dot(h1_scr[k], w2_ref[...],
                            preferred_element_type=jnp.float32)

    # ---- last step: bias + ReLU, Layer 3, exact sigmoid, store, flattened argmax ----
    @pl.when(k == KSTEPS - 1)
    def _():
        h2 = jnp.maximum(acc_scr[...] + b2_ref[...], 0.0)          # (Bp, HIDDEN) f32
        logits = jnp.dot(h2.astype(jnp.bfloat16), w3_ref[...],
                         preferred_element_type=jnp.float32) + b3_ref[...]  # (Bp, OUT_PAD)

        prob = pl.reciprocal(1.0 + jnp.exp(-logits), approx=False)  # exact sigmoid (f32)
        prob_ref[...] = prob.astype(prob_ref.dtype)

        # Flattened argmax over the valid (batch, 9) region, first-occurrence tie-break,
        # computed from the same prob values that were just stored.
        Bp, Kp = prob.shape
        row = jax.lax.broadcasted_iota(jnp.int32, (Bp, Kp), 0)
        col = jax.lax.broadcasted_iota(jnp.int32, (Bp, Kp), 1)
        valid = (row < batch) & (col < NUM_ACTIONS)
        masked = jnp.where(valid, prob, -1.0)
        maxval = jnp.max(masked)
        flat_idx = row * NUM_ACTIONS + col                # index into the unpadded (B, 9) layout
        big = jnp.int32(2 ** 30)
        z_ref[0] = jnp.min(jnp.where((masked == maxval) & valid, flat_idx, big))


def action_net_forward(g, s, params):
    """g: (B, num_goal_states), s: (B, num_around_states). Returns (z, prob[B, 9])."""
    w1g, w1s, b1, w2, b2, w3, b3 = params
    g = g.astype(jnp.float32)
    s = s.astype(jnp.float32)
    B = g.shape[0]

    # Pad the batch to a multiple of 8 so all sublanes / MXU rows do useful work.
    Bp = max(8, ((B + 7) // 8) * 8)
    if Bp != B:
        g = jnp.zeros((Bp, g.shape[1]), jnp.float32).at[:B].set(g)
        s = jnp.zeros((Bp, s.shape[1]), jnp.float32).at[:B].set(s)

    vmem = pl.BlockSpec(memory_space=pltpu.MemorySpace.VMEM)
    smem = pl.BlockSpec(memory_space=pltpu.MemorySpace.SMEM)

    kernel = functools.partial(_actionnet_kernel, batch=B)

    prob_pad, z = pl.pallas_call(
        kernel,
        out_shape=(
            jax.ShapeDtypeStruct((Bp, OUT_PAD), jnp.float32),
            jax.ShapeDtypeStruct((1,), jnp.int32),
        ),
        grid_spec=pltpu.PrefetchScalarGridSpec(
            num_scalar_prefetch=0,
            grid=(KSTEPS,),
            in_specs=[
                vmem, vmem,                                    # g, s
                vmem, vmem, vmem,                              # w1g, w1s, b1
                pl.BlockSpec((TK, HIDDEN), lambda k: (k, 0)),  # w2: streamed K chunks
                vmem,                                          # b2
                vmem, vmem,                                    # w3, b3 (fetched once)
            ],
            out_specs=(
                pl.BlockSpec((Bp, OUT_PAD), lambda k: (0, 0)),  # prob (written last step)
                smem,                                           # z
            ),
            scratch_shapes=[
                pltpu.VMEM((KSTEPS, Bp, TK), jnp.bfloat16),     # h1, pre-chunked along K
                pltpu.VMEM((Bp, HIDDEN), jnp.float32),          # layer-2 f32 accumulator
            ],
        ),
        compiler_params=pltpu.CompilerParams(
            dimension_semantics=("arbitrary",),
            vmem_limit_bytes=4 * 1024 * 1024,
        ),
    )(g, s, w1g, w1s, b1, w2, b2, w3, b3)
    return z[0], prob_pad[:B, :NUM_ACTIONS]


action_net_forward = jax.jit(action_net_forward)


def init_params(key, num_goal_states=2, num_around_states=4):
    """Deterministic synthetic init (uniform, roughly PyTorch-Linear-like scale).

    Weights are stored transposed relative to PyTorch (in_features, out_features),
    w1 pre-split by input, w2/w3 cast to bf16 (f32 accumulation in-kernel), and only
    the layer-3 output dim zero-padded to a lane-dense 128 columns.
    """
    d_in = num_goal_states + num_around_states
    k1, k2, k3, k4, k5, k6 = jax.random.split(key, 6)

    def u(k, shape, fan_in):
        bound = 1.0 / jnp.sqrt(jnp.float32(fan_in))
        return jax.random.uniform(k, shape, jnp.float32, -bound, bound)

    w1 = u(k1, (d_in, HIDDEN), d_in)
    b1 = u(k2, (1, HIDDEN), d_in)
    w2 = u(k3, (HIDDEN, HIDDEN), HIDDEN)
    b2 = u(k4, (1, HIDDEN), HIDDEN)
    w3 = u(k5, (HIDDEN, NUM_ACTIONS), HIDDEN)
    b3 = u(k6, (1, NUM_ACTIONS), HIDDEN)

    w1g = w1[:num_goal_states]                      # (NG, HIDDEN) f32
    w1s = w1[num_goal_states:]                      # (NS, HIDDEN) f32
    w2b = w2.astype(jnp.bfloat16)                   # (HIDDEN, HIDDEN) bf16
    w3p = (jnp.zeros((HIDDEN, OUT_PAD), jnp.float32)
           .at[:, :NUM_ACTIONS].set(w3).astype(jnp.bfloat16))
    b3p = jnp.zeros((1, OUT_PAD), jnp.float32).at[:, :NUM_ACTIONS].set(b3)
    return (w1g, w1s, b1, w2b, b2, w3p, b3p)


def _reference(g, s, params):
    """Pure-JAX reference with the same (bf16-weight, f32-accumulate) arithmetic."""
    w1g, w1s, b1, w2, b2, w3, b3 = params
    g = g.astype(jnp.float32)
    s = s.astype(jnp.float32)
    hi = jax.lax.Precision.HIGHEST
    h1 = jnp.maximum(jnp.dot(g, w1g, precision=hi) + jnp.dot(s, w1s, precision=hi) + b1, 0.0)
    h2 = jnp.maximum(
        jnp.dot(h1.astype(jnp.bfloat16), w2, preferred_element_type=jnp.float32) + b2, 0.0)
    logits = jnp.dot(h2.astype(jnp.bfloat16), w3, preferred_element_type=jnp.float32) + b3
    prob = jax.nn.sigmoid(logits)[:, :NUM_ACTIONS]
    z = jnp.argmax(prob)                            # flattened argmax, like torch.argmax
    return z, prob


if __name__ == "__main__":
    key = jax.random.PRNGKey(0)
    kp, kg, ks = jax.random.split(key, 3)

    batch = 2
    num_goal_states = 2
    num_around_states = 4

    params = init_params(kp, num_goal_states, num_around_states)
    g = jax.random.normal(kg, (batch, num_goal_states), jnp.float32)
    s = jax.random.normal(ks, (batch, num_around_states), jnp.float32)

    z, prob = action_net_forward(g, s, params)
    z = jax.block_until_ready(z)
    prob = jax.block_until_ready(prob)

    z_ref, prob_ref = _reference(g, s, params)
    assert prob.shape == (batch, NUM_ACTIONS)
    assert jnp.allclose(prob, prob_ref, atol=5e-3), "prob mismatch vs reference"
    assert int(z) == int(z_ref), "argmax mismatch vs reference"
    # z must also be the flattened argmax of the prob the kernel itself returned.
    assert int(z) == int(jnp.argmax(prob)), "z inconsistent with returned prob"

    print("KERNEL_OK")
</pallas_src>

<mosaic_0001>
module attributes {stable_mosaic.version = 11 : i64} {
  func.func @_actionnet_kernel(%arg0: i32, %arg1: memref<8x2xf32, #tpu.memory_space<vmem>>, %arg2: memref<8x4xf32, #tpu.memory_space<vmem>>, %arg3: memref<2x400xf32, #tpu.memory_space<vmem>>, %arg4: memref<4x400xf32, #tpu.memory_space<vmem>>, %arg5: memref<1x400xf32, #tpu.memory_space<vmem>>, %arg6: memref<80x400xbf16, #tpu.memory_space<vmem>>, %arg7: memref<1x400xf32, #tpu.memory_space<vmem>>, %arg8: memref<400x128xbf16, #tpu.memory_space<vmem>>, %arg9: memref<1x128xf32, #tpu.memory_space<vmem>>, %arg10: memref<8x128xf32, #tpu.memory_space<vmem>>, %arg11: memref<1xi32, #tpu.memory_space<smem>>, %arg12: memref<5x8x80xbf16, #tpu.memory_space<vmem>>, %arg13: memref<8x400xf32, #tpu.memory_space<vmem>>) attributes {dimension_semantics = [#tpu.dimension_semantics<arbitrary>], iteration_bounds = array<i64: 5>, scalar_prefetch = 0 : i64, scratch_operands = 2 : i64, tpu.core_type = #tpu.core_type<tc>, window_params = [{pipeline_mode = #tpu.pipeline_mode<synchronous>, transform_indices = @transform_0, window_bounds = array<i64: 8, 2>}, {pipeline_mode = #tpu.pipeline_mode<synchronous>, transform_indices = @transform_1, window_bounds = array<i64: 8, 4>}, {pipeline_mode = #tpu.pipeline_mode<synchronous>, transform_indices = @transform_2, window_bounds = array<i64: 2, 400>}, {pipeline_mode = #tpu.pipeline_mode<synchronous>, transform_indices = @transform_3, window_bounds = array<i64: 4, 400>}, {pipeline_mode = #tpu.pipeline_mode<synchronous>, transform_indices = @transform_4, window_bounds = array<i64: 1, 400>}, {transform_indices = @transform_5, window_bounds = array<i64: 80, 400>}, {pipeline_mode = #tpu.pipeline_mode<synchronous>, transform_indices = @transform_6, window_bounds = array<i64: 1, 400>}, {pipeline_mode = #tpu.pipeline_mode<synchronous>, transform_indices = @transform_7, window_bounds = array<i64: 400, 128>}, {pipeline_mode = #tpu.pipeline_mode<synchronous>, transform_indices = @transform_8, window_bounds = array<i64: 1, 128>}, {pipeline_mode = #tpu.pipeline_mode<synchronous>, transform_indices = @transform_9, window_bounds = array<i64: 8, 128>}, {transform_indices = @transform_10, window_bounds = array<i64: 1>}]} {
    %c0_i32 = arith.constant 0 : i32
    %0 = arith.cmpi eq, %arg0, %c0_i32 : i32
    %1 = arith.extui %0 : i1 to i32
    %c0_i32_0 = arith.constant 0 : i32
    %2 = arith.cmpi ne, %1, %c0_i32_0 : i32
    scf.if %2 {
      %c0_9 = arith.constant 0 : index
      %c0_10 = arith.constant 0 : index
      %14 = vector.load %arg1[%c0_9, %c0_10] : memref<8x2xf32, #tpu.memory_space<vmem>>, vector<8x2xf32>
      %c0_11 = arith.constant 0 : index
      %c0_12 = arith.constant 0 : index
      %15 = vector.load %arg2[%c0_11, %c0_12] : memref<8x4xf32, #tpu.memory_space<vmem>>, vector<8x4xf32>
      %16 = vector.extract_strided_slice %14 {offsets = [0, 0], sizes = [8, 1], strides = [1, 1]} : vector<8x2xf32> to vector<8x1xf32>
      %c0_13 = arith.constant 0 : index
      %c0_14 = arith.constant 0 : index
      %17 = vector.load %arg3[%c0_13, %c0_14] : memref<2x400xf32, #tpu.memory_space<vmem>>, vector<1x400xf32>
      %18 = vector.broadcast %16 : vector<8x1xf32> to vector<8x400xf32>
      %19 = vector.broadcast %17 : vector<1x400xf32> to vector<8x400xf32>
      %20 = arith.mulf %18, %19 : vector<8x400xf32>
      %21 = vector.extract_strided_slice %14 {offsets = [0, 1], sizes = [8, 1], strides = [1, 1]} : vector<8x2xf32> to vector<8x1xf32>
      %c1 = arith.constant 1 : index
      %c0_15 = arith.constant 0 : index
      %22 = vector.load %arg3[%c1, %c0_15] : memref<2x400xf32, #tpu.memory_space<vmem>>, vector<1x400xf32>
      %23 = vector.broadcast %21 : vector<8x1xf32> to vector<8x400xf32>
      %24 = vector.broadcast %22 : vector<1x400xf32> to vector<8x400xf32>
      %25 = arith.mulf %23, %24 : vector<8x400xf32>
      %26 = arith.addf %20, %25 : vector<8x400xf32>
      %27 = vector.extract_strided_slice %15 {offsets = [0, 0], sizes = [8, 1], strides = [1, 1]} : vector<8x4xf32> to vector<8x1xf32>
      %c0_16 = arith.constant 0 : index
      %c0_17 = arith.constant 0 : index
      %28 = vector.load %arg4[%c0_16, %c0_17] : memref<4x400xf32, #tpu.memory_space<vmem>>, vector<1x400xf32>
      %29 = vector.broadcast %27 : vector<8x1xf32> to vector<8x400xf32>
      %30 = vector.broadcast %28 : vector<1x400xf32> to vector<8x400xf32>
      %31 = arith.mulf %29, %30 : vector<8x400xf32>
      %32 = vector.extract_strided_slice %15 {offsets = [0, 1], sizes = [8, 1], strides = [1, 1]} : vector<8x4xf32> to vector<8x1xf32>
      %c1_18 = arith.constant 1 : index
      %c0_19 = arith.constant 0 : index
      %33 = vector.load %arg4[%c1_18, %c0_19] : memref<4x400xf32, #tpu.memory_space<vmem>>, vector<1x400xf32>
      %34 = vector.broadcast %32 : vector<8x1xf32> to vector<8x400xf32>
      %35 = vector.broadcast %33 : vector<1x400xf32> to vector<8x400xf32>
      %36 = arith.mulf %34, %35 : vector<8x400xf32>
      %37 = arith.addf %31, %36 : vector<8x400xf32>
      %38 = vector.extract_strided_slice %15 {offsets = [0, 2], sizes = [8, 1], strides = [1, 1]} : vector<8x4xf32> to vector<8x1xf32>
      %c2 = arith.constant 2 : index
      %c0_20 = arith.constant 0 : index
      %39 = vector.load %arg4[%c2, %c0_20] : memref<4x400xf32, #tpu.memory_space<vmem>>, vector<1x400xf32>
      %40 = vector.broadcast %38 : vector<8x1xf32> to vector<8x400xf32>
      %41 = vector.broadcast %39 : vector<1x400xf32> to vector<8x400xf32>
      %42 = arith.mulf %40, %41 : vector<8x400xf32>
      %43 = arith.addf %37, %42 : vector<8x400xf32>
      %44 = vector.extract_strided_slice %15 {offsets = [0, 3], sizes = [8, 1], strides = [1, 1]} : vector<8x4xf32> to vector<8x1xf32>
      %c3 = arith.constant 3 : index
      %c0_21 = arith.constant 0 : index
      %45 = vector.load %arg4[%c3, %c0_21] : memref<4x400xf32, #tpu.memory_space<vmem>>, vector<1x400xf32>
      %46 = vector.broadcast %44 : vector<8x1xf32> to vector<8x400xf32>
      %47 = vector.broadcast %45 : vector<1x400xf32> to vector<8x400xf32>
      %48 = arith.mulf %46, %47 : vector<8x400xf32>
      %49 = arith.addf %43, %48 : vector<8x400xf32>
      %50 = arith.addf %26, %49 : vector<8x400xf32>
      %c0_22 = arith.constant 0 : index
      %c0_23 = arith.constant 0 : index
      %51 = vector.load %arg5[%c0_22, %c0_23] : memref<1x400xf32, #tpu.memory_space<vmem>>, vector<1x400xf32>
      %52 = vector.broadcast %51 : vector<1x400xf32> to vector<8x400xf32>
      %53 = arith.addf %50, %52 : vector<8x400xf32>
      %cst_24 = arith.constant 0.000000e+00 : f32
      %54 = vector.broadcast %cst_24 : f32 to vector<8x400xf32>
      %55 = arith.maximumf %53, %54 : vector<8x400xf32>
      %56 = vector.extract_strided_slice %55 {offsets = [0, 0], sizes = [8, 80], strides = [1, 1]} : vector<8x400xf32> to vector<8x80xf32>
      %57 = arith.truncf %56 : vector<8x80xf32> to vector<8x80xbf16>
      %c0_25 = arith.constant 0 : index
      %c0_26 = arith.constant 0 : index
      %c0_27 = arith.constant 0 : index
      %58 = vector.load %arg12[%c0_25, %c0_26, %c0_27] : memref<5x8x80xbf16, #tpu.memory_space<vmem>>, vector<1x8x80xbf16>
      %59 = vector.shape_cast %58 : vector<1x8x80xbf16> to vector<8x80xbf16>
      %60 = vector.shape_cast %57 : vector<8x80xbf16> to vector<1x8x80xbf16>
      tpu.vector_store %arg12[%c0_25, %c0_26, %c0_27], %60 {strides = array<i32>} : memref<5x8x80xbf16, #tpu.memory_space<vmem>>, vector<1x8x80xbf16>,
      %61 = vector.extract_strided_slice %55 {offsets = [0, 80], sizes = [8, 80], strides = [1, 1]} : vector<8x400xf32> to vector<8x80xf32>
      %62 = arith.truncf %61 : vector<8x80xf32> to vector<8x80xbf16>
      %c1_28 = arith.constant 1 : index
      %c0_29 = arith.constant 0 : index
      %c0_30 = arith.constant 0 : index
      %63 = vector.load %arg12[%c1_28, %c0_29, %c0_30] : memref<5x8x80xbf16, #tpu.memory_space<vmem>>, vector<1x8x80xbf16>
      %64 = vector.shape_cast %63 : vector<1x8x80xbf16> to vector<8x80xbf16>
      %65 = vector.shape_cast %62 : vector<8x80xbf16> to vector<1x8x80xbf16>
      tpu.vector_store %arg12[%c1_28, %c0_29, %c0_30], %65 {strides = array<i32>} : memref<5x8x80xbf16, #tpu.memory_space<vmem>>, vector<1x8x80xbf16>,
      %66 = vector.extract_strided_slice %55 {offsets = [0, 160], sizes = [8, 80], strides = [1, 1]} : vector<8x400xf32> to vector<8x80xf32>
      %67 = arith.truncf %66 : vector<8x80xf32> to vector<8x80xbf16>
      %c2_31 = arith.constant 2 : index
      %c0_32 = arith.constant 0 : index
      %c0_33 = arith.constant 0 : index
      %68 = vector.load %arg12[%c2_31, %c0_32, %c0_33] : memref<5x8x80xbf16, #tpu.memory_space<vmem>>, vector<1x8x80xbf16>
      %69 = vector.shape_cast %68 : vector<1x8x80xbf16> to vector<8x80xbf16>
      %70 = vector.shape_cast %67 : vector<8x80xbf16> to vector<1x8x80xbf16>
      tpu.vector_store %arg12[%c2_31, %c0_32, %c0_33], %70 {strides = array<i32>} : memref<5x8x80xbf16, #tpu.memory_space<vmem>>, vector<1x8x80xbf16>,
      %71 = vector.extract_strided_slice %55 {offsets = [0, 240], sizes = [8, 80], strides = [1, 1]} : vector<8x400xf32> to vector<8x80xf32>
      %72 = arith.truncf %71 : vector<8x80xf32> to vector<8x80xbf16>
      %c3_34 = arith.constant 3 : index
      %c0_35 = arith.constant 0 : index
      %c0_36 = arith.constant 0 : index
      %73 = vector.load %arg12[%c3_34, %c0_35, %c0_36] : memref<5x8x80xbf16, #tpu.memory_space<vmem>>, vector<1x8x80xbf16>
      %74 = vector.shape_cast %73 : vector<1x8x80xbf16> to vector<8x80xbf16>
      %75 = vector.shape_cast %72 : vector<8x80xbf16> to vector<1x8x80xbf16>
      tpu.vector_store %arg12[%c3_34, %c0_35, %c0_36], %75 {strides = array<i32>} : memref<5x8x80xbf16, #tpu.memory_space<vmem>>, vector<1x8x80xbf16>,
      %76 = vector.extract_strided_slice %55 {offsets = [0, 320], sizes = [8, 80], strides = [1, 1]} : vector<8x400xf32> to vector<8x80xf32>
      %77 = arith.truncf %76 : vector<8x80xf32> to vector<8x80xbf16>
      %c4 = arith.constant 4 : index
      %c0_37 = arith.constant 0 : index
      %c0_38 = arith.constant 0 : index
      %78 = vector.load %arg12[%c4, %c0_37, %c0_38] : memref<5x8x80xbf16, #tpu.memory_space<vmem>>, vector<1x8x80xbf16>
      %79 = vector.shape_cast %78 : vector<1x8x80xbf16> to vector<8x80xbf16>
      %80 = vector.shape_cast %77 : vector<8x80xbf16> to vector<1x8x80xbf16>
      tpu.vector_store %arg12[%c4, %c0_37, %c0_38], %80 {strides = array<i32>} : memref<5x8x80xbf16, #tpu.memory_space<vmem>>, vector<1x8x80xbf16>,
      %cst_39 = arith.constant 0.000000e+00 : f32
      %81 = vector.broadcast %cst_39 : f32 to vector<8x400xf32>
      %c0_40 = arith.constant 0 : index
      %c0_41 = arith.constant 0 : index
      %82 = vector.load %arg13[%c0_40, %c0_41] : memref<8x400xf32, #tpu.memory_space<vmem>>, vector<8x400xf32>
      tpu.vector_store %arg13[%c0_40, %c0_41], %81 {strides = array<i32>} : memref<8x400xf32, #tpu.memory_space<vmem>>, vector<8x400xf32>,
    } else {
    }
    %c0 = arith.constant 0 : index
    %c0_1 = arith.constant 0 : index
    %3 = vector.load %arg13[%c0, %c0_1] : memref<8x400xf32, #tpu.memory_space<vmem>>, vector<8x400xf32>
    %4 = arith.index_cast %arg0 : i32 to index
    %c0_2 = arith.constant 0 : index
    %c0_3 = arith.constant 0 : index
    %5 = vector.load %arg12[%4, %c0_2, %c0_3] : memref<5x8x80xbf16, #tpu.memory_space<vmem>>, vector<1x8x80xbf16>
    %6 = vector.shape_cast %5 : vector<1x8x80xbf16> to vector<8x80xbf16>
    %c0_4 = arith.constant 0 : index
    %c0_5 = arith.constant 0 : index
    %7 = vector.load %arg6[%c0_4, %c0_5] : memref<80x400xbf16, #tpu.memory_space<vmem>>, vector<80x400xbf16>
    %cst = arith.constant dense<0.000000e+00> : vector<8x400xf32>
    %8 = tpu.matmul %6, %7, %cst {dimension_numbers = #tpu.dot_dimension_numbers<[1], [0], [0], [1], [0, 0, 1, 1], [], []>} : vector<8x80xbf16>, vector<80x400xbf16>, vector<8x400xf32> -> vector<8x400xf32>
    %9 = arith.addf %3, %8 : vector<8x400xf32>
    %c0_6 = arith.constant 0 : index
    %c0_7 = arith.constant 0 : index
    %10 = vector.load %arg13[%c0_6, %c0_7] : memref<8x400xf32, #tpu.memory_space<vmem>>, vector<8x400xf32>
    tpu.vector_store %arg13[%c0_6, %c0_7], %9 {strides = array<i32>} : memref<8x400xf32, #tpu.memory_space<vmem>>, vector<8x400xf32>,
    %c4_i32 = arith.constant 4 : i32
    %11 = arith.cmpi eq, %arg0, %c4_i32 : i32
    %12 = arith.extui %11 : i1 to i32
    %c0_i32_8 = arith.constant 0 : i32
    %13 = arith.cmpi ne, %12, %c0_i32_8 : i32
    scf.if %13 {
      %c0_9 = arith.constant 0 : index
      %c0_10 = arith.constant 0 : index
      %14 = vector.load %arg13[%c0_9, %c0_10] : memref<8x400xf32, #tpu.memory_space<vmem>>, vector<8x400xf32>
      %c0_11 = arith.constant 0 : index
      %c0_12 = arith.constant 0 : index
      %15 = vector.load %arg7[%c0_11, %c0_12] : memref<1x400xf32, #tpu.memory_space<vmem>>, vector<1x400xf32>
      %16 = vector.broadcast %15 : vector<1x400xf32> to vector<8x400xf32>
      %17 = arith.addf %14, %16 : vector<8x400xf32>
      %cst_13 = arith.constant 0.000000e+00 : f32
      %18 = vector.broadcast %cst_13 : f32 to vector<8x400xf32>
      %19 = arith.maximumf %17, %18 : vector<8x400xf32>
      %20 = arith.truncf %19 : vector<8x400xf32> to vector<8x400xbf16>
      %c0_14 = arith.constant 0 : index
      %c0_15 = arith.constant 0 : index
      %21 = vector.load %arg8[%c0_14, %c0_15] : memref<400x128xbf16, #tpu.memory_space<vmem>>, vector<400x128xbf16>
      %cst_16 = arith.constant dense<0.000000e+00> : vector<8x128xf32>
      %22 = tpu.matmul %20, %21, %cst_16 {dimension_numbers = #tpu.dot_dimension_numbers<[1], [0], [0], [1], [0, 0, 1, 1], [], []>} : vector<8x400xbf16>, vector<400x128xbf16>, vector<8x128xf32> -> vector<8x128xf32>
      %c0_17 = arith.constant 0 : index
      %c0_18 = arith.constant 0 : index
      %23 = vector.load %arg9[%c0_17, %c0_18] : memref<1x128xf32, #tpu.memory_space<vmem>>, vector<1x128xf32>
      %24 = vector.broadcast %23 : vector<1x128xf32> to vector<8x128xf32>
      %25 = arith.addf %22, %24 : vector<8x128xf32>
      %cst_19 = arith.constant 0.000000e+00 : f32
      %26 = vector.broadcast %cst_19 : f32 to vector<8x128xf32>
      %27 = arith.subf %26, %25 : vector<8x128xf32>
      %28 = math.exp %27 : vector<8x128xf32>
      %cst_20 = arith.constant 1.000000e+00 : f32
      %29 = vector.broadcast %cst_20 : f32 to vector<8x128xf32>
      %30 = arith.addf %29, %28 : vector<8x128xf32>
      %31 = tpu.reciprocal %30 : vector<8x128xf32> -> vector<8x128xf32>
      %c0_21 = arith.constant 0 : index
      %c0_22 = arith.constant 0 : index
      %32 = vector.load %arg10[%c0_21, %c0_22] : memref<8x128xf32, #tpu.memory_space<vmem>>, vector<8x128xf32>
      tpu.vector_store %arg10[%c0_21, %c0_22], %31 {strides = array<i32>} : memref<8x128xf32, #tpu.memory_space<vmem>>, vector<8x128xf32>,
      %33 = tpu.iota {dimensions = array<i32: 0>} : vector<8x128xi32>
      %34 = tpu.iota {dimensions = array<i32: 1>} : vector<8x128xi32>
      %c2_i32 = arith.constant 2 : i32
      %35 = vector.broadcast %c2_i32 : i32 to vector<8x128xi32>
      %36 = arith.cmpi slt, %33, %35 : vector<8x128xi32>
      %c9_i32 = arith.constant 9 : i32
      %37 = vector.broadcast %c9_i32 : i32 to vector<8x128xi32>
      %38 = arith.cmpi slt, %34, %37 : vector<8x128xi32>
      %39 = arith.andi %36, %38 : vector<8x128xi1>
      %cst_23 = arith.constant -1.000000e+00 : f32
      %40 = vector.broadcast %cst_23 : f32 to vector<8x128xf32>
      %41 = arith.select %39, %31, %40 : vector<8x128xi1>, vector<8x128xf32>
      %42 = vector.shape_cast %41 : vector<8x128xf32> to vector<1x8x128xf32>
      %cst_24 = arith.constant dense<0xFF800000> : vector<1xf32>
      %43 = vector.multi_reduction <maximumf>, %42, %cst_24 [1, 2] : vector<1x8x128xf32> to vector<1xf32>
      %44 = vector.shape_cast %43 : vector<1xf32> to vector<1x1x1xf32>
      %45 = vector.extract %44[0, 0, 0] : f32 from vector<1x1x1xf32>
      %c9_i32_25 = arith.constant 9 : i32
      %46 = vector.broadcast %c9_i32_25 : i32 to vector<8x128xi32>
      %47 = arith.muli %33, %46 : vector<8x128xi32>
      %48 = arith.addi %47, %34 : vector<8x128xi32>
      %49 = vector.broadcast %45 : f32 to vector<8x128xf32>
      %50 = arith.cmpf oeq, %41, %49 : vector<8x128xf32>
      %51 = arith.andi %50, %39 : vector<8x128xi1>
      %c1073741824_i32 = arith.constant 1073741824 : i32
      %52 = vector.broadcast %c1073741824_i32 : i32 to vector<8x128xi32>
      %53 = arith.select %51, %48, %52 : vector<8x128xi1>, vector<8x128xi32>
      %54 = vector.shape_cast %53 : vector<8x128xi32> to vector<1x8x128xi32>
      %cst_26 = arith.constant dense<2147483647> : vector<1xi32>
      %55 = vector.multi_reduction <minsi>, %54, %cst_26 [1, 2] : vector<1x8x128xi32> to vector<1xi32>
      %56 = vector.shape_cast %55 : vector<1xi32> to vector<1x1x1xi32>
      %57 = vector.extract %56[0, 0, 0] : i32 from vector<1x1x1xi32>
      %c0_27 = arith.constant 0 : index
      %58 = memref.load %arg11[%c0_27] : memref<1xi32, #tpu.memory_space<smem>>
      memref.store %57, %arg11[%c0_27] : memref<1xi32, #tpu.memory_space<smem>>
    } else {
    }
    return
  }
  func.func @transform_0(%arg0: i32) -> (i32, i32) {
    %c0_i32 = arith.constant 0 : i32
    %c0_i32_0 = arith.constant 0 : i32
    %c0_i32_1 = arith.constant 0 : i32
    return %c0_i32, %c0_i32_0 : i32, i32
  }
  func.func @transform_1(%arg0: i32) -> (i32, i32) {
    %c0_i32 = arith.constant 0 : i32
    %c0_i32_0 = arith.constant 0 : i32
    %c0_i32_1 = arith.constant 0 : i32
    return %c0_i32, %c0_i32_0 : i32, i32
  }
  func.func @transform_2(%arg0: i32) -> (i32, i32) {
    %c0_i32 = arith.constant 0 : i32
    %c0_i32_0 = arith.constant 0 : i32
    %c0_i32_1 = arith.constant 0 : i32
    return %c0_i32, %c0_i32_0 : i32, i32
  }
  func.func @transform_3(%arg0: i32) -> (i32, i32) {
    %c0_i32 = arith.constant 0 : i32
    %c0_i32_0 = arith.constant 0 : i32
    %c0_i32_1 = arith.constant 0 : i32
    return %c0_i32, %c0_i32_0 : i32, i32
  }
  func.func @transform_4(%arg0: i32) -> (i32, i32) {
    %c0_i32 = arith.constant 0 : i32
    %c0_i32_0 = arith.constant 0 : i32
    %c0_i32_1 = arith.constant 0 : i32
    return %c0_i32, %c0_i32_0 : i32, i32
  }
  func.func @transform_5(%arg0: i32) -> (i32, i32) {
    %c0_i32 = arith.constant 0 : i32
    %c0_i32_0 = arith.constant 0 : i32
    return %arg0, %c0_i32 : i32, i32
  }
  func.func @transform_6(%arg0: i32) -> (i32, i32) {
    %c0_i32 = arith.constant 0 : i32
    %c0_i32_0 = arith.constant 0 : i32
    %c0_i32_1 = arith.constant 0 : i32
    return %c0_i32, %c0_i32_0 : i32, i32
  }
  func.func @transform_7(%arg0: i32) -> (i32, i32) {
    %c0_i32 = arith.constant 0 : i32
    %c0_i32_0 = arith.constant 0 : i32
    %c0_i32_1 = arith.constant 0 : i32
    return %c0_i32, %c0_i32_0 : i32, i32
  }
  func.func @transform_8(%arg0: i32) -> (i32, i32) {
    %c0_i32 = arith.constant 0 : i32
    %c0_i32_0 = arith.constant 0 : i32
    %c0_i32_1 = arith.constant 0 : i32
    return %c0_i32, %c0_i32_0 : i32, i32
  }
  func.func @transform_9(%arg0: i32) -> (i32, i32) {
    %c0_i32 = arith.constant 0 : i32
    %c0_i32_0 = arith.constant 0 : i32
    %c0_i32_1 = arith.constant 0 : i32
    return %c0_i32, %c0_i32_0 : i32, i32
  }
  func.func @transform_10(%arg0: i32) -> i32 {
    %c0_i32 = arith.constant 0 : i32
    %c0_i32_0 = arith.constant 0 : i32
    return %c0_i32 : i32
  }
}

</mosaic_0001>

<bundles_post_ra>
// kernel: action_net_forward.1
= control target key start
LH: loop header
LB: loop body
LE: loop exit
PB: predicated region body
PF: predicated region fallthrough
CT: control target
= control target key end

     0   :  { %16 = vsyncpa [#allocation5], 0  ;;  %s2081_s0 = inlined_call_operand.vmem [shape: f32[8,2], index: 0, kind: input, shape index: {}]   ;;  %s2082_s1 = inlined_call_operand.vmem [shape: f32[8,4], index: 1, kind: input, shape index: {}]   ;;  %s2083_s2 = inlined_call_operand.vmem [shape: f32[2,400], index: 2, kind: input, shape index: {}]   ;;  %s2084_s3 = inlined_call_operand.vmem [shape: f32[4,400], index: 3, kind: input, shape index: {}]   ;;  %s2085_s4 = inlined_call_operand.vmem [shape: f32[1,400], index: 4, kind: input, shape index: {}]   ;;  %s2086_s5 = inlined_call_operand.hbm [shape: bf16[400,400], index: 5, kind: input, shape index: {}]   ;;  %s2087_s6 = inlined_call_operand.vmem [shape: f32[1,400], index: 6, kind: input, shape index: {}]   ;;  %s2088_s7 = inlined_call_operand.hbm [shape: bf16[400,128], index: 7, kind: input, shape index: {}]   ;;  %s2089_s8 = inlined_call_operand.vmem [shape: f32[1,128], index: 8, kind: input, shape index: {}]   ;;  %s2090_s9 = inlined_call_operand.vmem [shape: f32[8,128], index: 9, kind: output, shape index: {0}]   ;;  %s2091_s10 = inlined_call_operand.hbm [shape: s32[1], index: 10, kind: output, shape index: {1}]  }
   0x1   :  { %18 = vsyncpa [#allocation5 + $0x1], 0 }
   0x2   :  { %19 = vsyncpa [#allocation8], 0 }
   0x3   :  { %20 = vsyncpa [#allocation6], 0  ;;  %s1790_s13 = smov 0   ;;  %s1792_s14 = smov 0  }
   0x4   :  { %s1794_s15 = smov 0   ;;  %s1796_s16 = smov 0  }
   0x5 LB: > { %s1809_s17 = sadd.s32 4294967295, %s1715_s16   ;;  %p151_p0 = scmp.ne.s32.totalorder %s1707_s14, %s1703_s13  ;;  %s1715_s16 = sphi %s1796_s16, %s2109_s16   ;;  %s1711_s15 = sphi %s1794_s15, %s2112_s15   ;;  %s1707_s14 = sphi %s1792_s14, %s2111_s14   ;;  %s1703_s13 = sphi %s1790_s13, %s2110_s13  }
   0x6   : > { %p2092_p1 = scmp.eq.s32.totalorder %s1809_s17, 0  ;;  %p1360_p2 = scmp.ge.s32.totalorder %s1715_s16, 1 }
   0x7   : > { %p267_p3 = scmp.lt.s32.totalorder %s1715_s16, 6  ;;  %s1717_s20 = smov [#allocation7]  }
   0x8   : > { %p1818_p5 = por %p2092_p1, %p151_p0  ;;  %s297_s21 = sshll.u32 %s1717_s20, 4  ;;  %s298_s21 = int_to_ptr.vmem [resolvable:$true] %s297_s21 }
   0x9   : > { %p1822_p6 = pnand %p1360_p2, %p267_p3  ;;  %s1835_s23 = sadd.s32 1, %s1715_s16  }
   0xa   : > { %s2097_s18 = scalar_select %p1818_p5, 1, 0 }
   0xb   : > { %s2098_s19 = scalar_select %p1822_p6, 1, 0 }
   0xc   : > { %p1476_p7 = pneg %p1822_p6  ;;  %2100 = sst [smem:[#allocation13_spill]] %s1835_s23 }
   0xd   : > { %s138_s24 = sadd.s32 1, %s1711_s15  ;;  %s135_s25 = ssub.s32 %s1715_s16, %s1835_s23 }
   0xe   : > { %p1830_p8 = pnand %p1476_p7, %p2092_p1  ;;  %s1603_s28 = scalar_lea.hbm %s2088_s7, 3200 }
   0xf   : > { %p1604_p9 = scmp.ne.s32.totalorder %s2088_s7, %s1603_s28  ;;  %p1610_p13 = scmp.lt.u32.totalorder %s1603_s28, %s2088_s7 }
  0x10   : > { %p1605_p10 = pneg %p1830_p8 }
  0x12   : > { %p1606_p11 = pnand %p1605_p10, %p1604_p9 }
  0x14   : > { %p1607_p12 = pneg %p1606_p11 }
  0x16   : > { %p1612_p0 = pnand %p1610_p13, %p1607_p12 }
  0x18   : > { %1615 = shalt.err (!%p1612_p0)
}
  0x19   : > { %s1616_s13 = scalar_lea.vmem %s298_s21, 3200  ;;  %p1624_p4 = scmp.lt.s32.totalorder %s298_s21, %s298_s21 }
  0x1a   : > { %p1617_p2 = scmp.ne.s32.totalorder %s298_s21, %s1616_s13  ;;  %p1625_p1 = scmp.lt.s32.totalorder %s1616_s13, %s1616_s13 }
  0x1c   : > { %p1619_p3 = pnand %p1617_p2, %p1605_p10  ;;  %p1626_p5 = por %p1625_p1, %p1624_p4 }
  0x1e   : > { %p1620_p7 = pneg %p1619_p3 }
  0x20   : > { %p1627_p6 = pnand %p1626_p5, %p1620_p7 }
  0x22   : > { %1630 = shalt.err (!%p1627_p6)
}
  0x23   : > { %s1718_s20 = smov 64   ;;  %s1719_s26 = smov 4  }
  0x24   : > { %1479 = dma.hbm_to_vmem [thread:$0]  (!%p1830_p8), %s2088_s7, 3200, %s298_s21, [#allocation8], %s1718_s20, %s1718_s20, %s1719_s26  }
  0x25   : > { %p136_p9 = scmp.eq.s32.totalorder %s135_s25, 0  ;;  %p145_p10 = scmp.ne.s32.totalorder %s1711_s15, %s1707_s14 }
  0x26   : > { %p146_p1 = scmp.eq.s32.totalorder %s1715_s16, 0  ;;  %p1485_p4 = scmp.lt.s32.totalorder %s1715_s16, 5 }
  0x27   : > { %s1861_s29 = scalar_select %p136_p9, %s1711_s15, %s138_s24  }
  0x28   : > { %p147_p5 = por %p146_p1, %p145_p10  ;;  %s314_s30 = sand.u32 1, %s1711_s15  }
  0x29   : > { %s1460_s11 = smul.u32 160, %s314_s30  ;;  %s1636_s27 = scalar_lea.hbm %s2086_s5, 12800 }
  0x2a   : > { %s1437_s12 = smul.u32 2560, %s1715_s16  ;;  %p1865_p6 = pnand %p1485_p4, %p147_p5 }
  0x2b   : > { %s318_s24 = scalar_lea.vmem [#allocation4], %s1460_s11  ;;  %s1876_s16 = scalar_lea.sflag [#allocation5], %s314_s30 }
  0x2c   : > { %s1872_s21 = scalar_lea.hbm %s2086_s5, %s1437_s12  ;;  %s326_s25 = sshll.u32 %s318_s24, 4  ;;  %s1874_s25 = int_to_ptr.vmem [resolvable:$true] %s326_s25 }
  0x2d   : > { %s1631_s20 = scalar_lea.hbm %s1872_s21, 2560  ;;  %p1633_p11 = pneg %p1865_p6 }
  0x2e   : > { %p1632_p8 = scmp.ne.s32.totalorder %s1872_s21, %s1631_s20  ;;  %p1637_p0 = scmp.lt.u32.totalorder %s1872_s21, %s2086_s5 }
  0x2f   : > { %p1638_p2 = scmp.lt.u32.totalorder %s1636_s27, %s1631_s20  ;;  %p1640_p7 = scmp.lt.u32.totalorder %s1631_s20, %s1872_s21 }
  0x30   : > { %p1634_p12 = pnand %p1633_p11, %p1632_p8 }
  0x31   : > { %p1639_p3 = por %p1638_p2, %p1637_p0 }
  0x32   : > { %p1635_p13 = pneg %p1634_p12 }
  0x33   : > { %p1641_p9 = por %p1640_p7, %p1639_p3 }
  0x35   : > { %p1642_p10 = pnand %p1641_p9, %p1635_p13 }
  0x37   : > { %1645 = shalt.err (!%p1642_p10)
}
  0x38   : > { %s1646_s30 = scalar_lea.vmem %s1874_s25, 2560  ;;  %s1720_s11 = smov [#allocation4]  }
  0x39   : > { %p1647_p1 = scmp.ne.s32.totalorder %s1874_s25, %s1646_s30  ;;  %s1651_s22 = sshll.u32 %s1720_s11, 4  ;;  %s1652_s22 = int_to_ptr.vmem [resolvable:$false] %s1651_s22 }
  0x3a   : > { %s1653_s24 = scalar_lea.vmem %s1652_s22, 5120  ;;  %p1654_p8 = scmp.lt.s32.totalorder %s1874_s25, %s1652_s22 }
  0x3b   : > { %p1649_p4 = pnand %p1647_p1, %p1633_p11  ;;  %p1655_p12 = scmp.lt.s32.totalorder %s1653_s24, %s1646_s30 }
  0x3d   : > { %p1650_p5 = pneg %p1649_p4  ;;  %p1656_p0 = por %p1655_p12, %p1654_p8 }
  0x3f   : > { %p1657_p2 = pnand %p1656_p0, %p1650_p5 }
  0x41   : > { %1660 = shalt.err (!%p1657_p2)
}
  0x42   : > { %s1721_s20 = smov 256   ;;  %s1722_s23 = smov 16  }
  0x43   : > { %1483 = dma.hbm_to_vmem [thread:$0]  (!%p1865_p6), %s1872_s21, 2560, %s1874_s25, %s1876_s16, %s1721_s20, %s1721_s20, %s1722_s23  }
  0x44   : > { %p2102_p11 = scmp.ne.s32.totalorder %s2098_s19, 0 }
  0x45   : > { %s340_s26 = sand.u32 (!%p2102_p11), 1, %s1707_s14   ;;  %p2103_p13 = scmp.ne.s32.totalorder (!%p2102_p11), %s2097_s18, 0 }
  0x46   : > { %338 = sbr.rel (%p2102_p11) target bundleno = 1439 (0x59f), region = 56  ;;  %s341_s28 = scalar_lea.sflag (!%p2102_p11), [#allocation5], %s340_s26 }
  0x47   : > { %s1461_s27 = smul.u32 (!%p2102_p11), 160, %s340_s26 }
  0x49   : > { %s1907_s12 = scalar_lea.vmem (!%p2102_p11), [#allocation4], %s1461_s27 }
  0x4d   : > { %1690 = dma.done.wait (%p2103_p13), %s341_s28, 2560  }
  0x4e   : > { %1692 = vsyncadd (%p2103_p13), %s341_s28, 4294964736  ;;  %p2104_p3 = scmp.eq.s32.totalorder %s1809_s17, 0 }
  0x50   : > { %1694 = dma.done.wait (%p2104_p3), [#allocation8], 3200   ;;  %p2105_p6 = pmov %p2104_p3 }
  0x51   : > { %p2106_p7 = scmp.ne.s32.totalorder %s1809_s17, 0 }
  0x52   : > { %1696 = vsyncadd (%p2105_p6), [#allocation8], 4294964096  ;;  %v387_v0 = vld [vmem:[%s2082_s1] sm:$0xff] (!%p2106_p7)  ;;  %v1723_v1 = vmov (!%p2106_p7), 2   ;;  %v1724_v2 = vmov (!%p2106_p7), 0   ;;  %v1725_v4 = vmov (!%p2106_p7), 1   ;;  %v395_v6 = vlaneseq (!%p2106_p7) }
  0x53   : > { %385 = sbr.rel (%p2106_p7) target bundleno = 359 (0x167), region = 68  ;;  %1540 = vset.pattern.permute.xlu1 (!%p2106_p7), %v1723_v1  ;;  %1538 = vset.pattern.permute.xlu0 (!%p2106_p7), %v1724_v2  ;;  %v386_v3 = vld [vmem:[%s2081_s0] sm:$0xff] (!%p2106_p7)  ;;  %v1726_v5 = vmov (!%p2106_p7), 3   ;;  %vm654_vm0 = vcmask (!%p2106_p7), 130048   ;;  %vm625_vm1 = vcmask (!%p2106_p7), 650240   ;;  %s1728_s21 = smov (!%p2106_p7), 64  }
  0x54   : > { %523 = vperm.xlu1 (!%p2106_p7), %1540, %v387_v0   ;;  %457 = vperm.xlu0 (!%p2106_p7), %1538, %v387_v0   ;;  %v396_v7 = vshrl.u32 (!%p2106_p7), %v395_v6, 7  ;;  %v1370_v12 = vld [vmem:[%s2084_s3 + $0x2] ss:$4 sm:$0xf] (!%p2106_p7)  ;;  %s1729_s25 = smov (!%p2106_p7), 48   ;;  %s1730_s16 = smov (!%p2106_p7), 16  }
  0x55   : > { %v454_v13 = vld [vmem:[%s2084_s3] ss:$4 sm:$0xf] (!%p2106_p7)  ;;  %v1369_v14 = vld [vmem:[%s2084_s3 + $0x1] ss:$4 sm:$0xf] (!%p2106_p7) }
  0x56   : > { %v1925_v8 = vsub.s32 (!%p2106_p7), 0, %v396_v7  ;;  %v1927_v9 = vsub.s32 (!%p2106_p7), 1, %v396_v7  ;;  %v1929_v10 = vsub.s32 (!%p2106_p7), 2, %v396_v7  ;;  %v1931_v11 = vsub.s32 (!%p2106_p7), 3, %v396_v7  ;;  %v1970_v36 = vld [vmem:[%s2085_s4] sm:$0xf] (!%p2106_p7) }
  0x57   : > { %v388_v19 = vld [vmem:[%s2083_s2] ss:$2 sm:$0xf] (!%p2106_p7)  ;;  %v1371_v24 = vld [vmem:[%s2084_s3 + $0x3] ss:$4 sm:$0xf] (!%p2106_p7) }
  0x58   : > { %1541 = vset.pattern.permute.xlu1 (!%p2106_p7), %v1724_v2  ;;  %1539 = vset.pattern.permute.xlu0 (!%p2106_p7), %v1725_v4  ;;  %v530_v15 = vrot.slane (!%p2106_p7), %v1370_v12, %v1925_v8  ;;  %v534_v16 = vrot.slane (!%p2106_p7), %v1370_v12, %v1927_v9  ;;  %v538_v17 = vrot.slane (!%p2106_p7), %v1370_v12, %v1929_v10  ;;  %v1368_v31 = vld [vmem:[%s2083_s2 + $0x1] ss:$2 sm:$0xf] (!%p2106_p7)  ;;  %s1731_s30 = smov (!%p2106_p7), 96   ;;  %vm666_vm2 = vcmask (!%p2106_p7), 523264  }
  0x59   : > { %488 = vperm.xlu0 (!%p2106_p7), %1539, %v387_v0   ;;  %391 = vperm.xlu1 (!%p2106_p7), %1541, %v386_v3   ;;  %v542_v18 = vrot.slane (!%p2106_p7), %v1370_v12, %v1931_v11  ;;  %v464_v20 = vrot.slane (!%p2106_p7), %v454_v13, %v1925_v8  ;;  %v468_v21 = vrot.slane (!%p2106_p7), %v454_v13, %v1927_v9  ;;  %vm636_vm3 = vcmask (!%p2106_p7), 392192  }
  0x5a   : > { %v472_v22 = vrot.slane %v454_v13, %v1929_v10  ;;  %v476_v23 = vrot.slane %v454_v13, %v1931_v11  ;;  %v495_v27 = vrot.slane %v1369_v14, %v1925_v8  ;;  %v499_v28 = vrot.slane %v1369_v14, %v1927_v9 }
  0x5b   : > { %v503_v29 = vrot.slane %v1369_v14, %v1929_v10  ;;  %v507_v30 = vrot.slane %v1369_v14, %v1931_v11  ;;  %v398_v32 = vrot.slane %v388_v19, %v1925_v8  ;;  %v402_v33 = vrot.slane %v388_v19, %v1927_v9 }
  0x5c   : > { %v406_v34 = vrot.slane %v388_v19, %v1929_v10  ;;  %v410_v35 = vrot.slane %v388_v19, %v1931_v11  ;;  %v565_v37 = vrot.slane %v1371_v24, %v1925_v8  ;;  %v569_v38 = vrot.slane %v1371_v24, %v1927_v9 }
  0x5d   : > { %1543 = vset.pattern.permute.xlu0 %v1726_v5  ;;  %1542 = vset.pattern.permute.xlu1 %v1725_v4  ;;  %v573_v39 = vrot.slane %v1371_v24, %v1929_v10  ;;  %v577_v40 = vrot.slane %v1371_v24, %v1931_v11  ;;  %v429_v41 = vrot.slane %v1368_v31, %v1925_v8 }
  0x5e   : > { %558 = vperm.xlu0 %1543, %v387_v0   ;;  %422 = vperm.xlu1 %1542, %v386_v3   ;;  %v433_v42 = vrot.slane %v1368_v31, %v1927_v9  ;;  %v437_v43 = vrot.slane %v1368_v31, %v1929_v10  ;;  %v441_v44 = vrot.slane %v1368_v31, %v1931_v11 }
  0x5f   : > { %v607_v45 = vrot.slane %v1970_v36, %v1929_v10  ;;  %v611_v46 = vrot.slane %v1970_v36, %v1931_v11  ;;  %v599_v47 = vrot.slane %v1970_v36, %v1925_v8  ;;  %v603_v48 = vrot.slane %v1970_v36, %v1927_v9 }
  0xd3   : > { %v524_v25 = vpop.permute.xlu1 %523  ;;  %v458_v26 = vpop.permute.xlu0 %457 }
  0xd4   : > { %v481_v49 = vmul.f32 %v464_v20, %v458_v26  ;;  %v482_v50 = vmul.f32 %v468_v21, %v458_v26  ;;  %v483_v51 = vmul.f32 %v472_v22, %v458_v26  ;;  %v484_v52 = vmul.f32 %v476_v23, %v458_v26 }
  0xd5   : > { %v547_v59 = vmul.f32 %v530_v15, %v524_v25  ;;  %v548_v60 = vmul.f32 %v534_v16, %v524_v25  ;;  %v549_v61 = vmul.f32 %v538_v17, %v524_v25  ;;  %v550_v62 = vmul.f32 %v542_v18, %v524_v25 }
  0xd8   : > { %v489_v53 = vpop.permute.xlu0 %488  ;;  %v392_v54 = vpop.permute.xlu1 %391 }
  0xd9   : > { %v512_v55 = vmul.f32 %v495_v27, %v489_v53  ;;  %v513_v56 = vmul.f32 %v499_v28, %v489_v53  ;;  %v514_v57 = vmul.f32 %v503_v29, %v489_v53  ;;  %v515_v58 = vmul.f32 %v507_v30, %v489_v53 }
  0xda   : > { %v415_v3 = vmul.f32 %v398_v32, %v392_v54  ;;  %v416_v4 = vmul.f32 %v402_v33, %v392_v54  ;;  %v417_v5 = vmul.f32 %v406_v34, %v392_v54  ;;  %v418_v6 = vmul.f32 %v410_v35, %v392_v54 }
  0xdb   : > { %v516_v63 = vadd.f32 %v512_v55, %v481_v49  ;;  %v517_v0 = vadd.f32 %v513_v56, %v482_v50  ;;  %v518_v1 = vadd.f32 %v514_v57, %v483_v51  ;;  %v519_v2 = vadd.f32 %v515_v58, %v484_v52 }
  0xdc   : > { %v1727_v33 = vmov 0.0  }
  0xdd   : > { %v551_v7 = vadd.f32 %v547_v59, %v516_v63  ;;  %v552_v8 = vadd.f32 %v548_v60, %v517_v0  ;;  %v553_v9 = vadd.f32 %v549_v61, %v518_v1  ;;  %v554_v10 = vadd.f32 %v550_v62, %v519_v2  ;;  %v559_v11 = vpop.permute.xlu0 %558  ;;  %v423_v12 = vpop.permute.xlu1 %422  ;;  %671 = vst [vmem:[#allocation3] sm:$0xff] %v1727_v33 }
  0xde   : > { %v582_v13 = vmul.f32 %v565_v37, %v559_v11  ;;  %v583_v14 = vmul.f32 %v569_v38, %v559_v11  ;;  %v584_v15 = vmul.f32 %v573_v39, %v559_v11  ;;  %v585_v16 = vmul.f32 %v577_v40, %v559_v11  ;;  %672 = vst [vmem:[#allocation3 + $0x8] sm:$0xff] %v1727_v33 }
  0xdf   : > { %v446_v17 = vmul.f32 %v429_v41, %v423_v12  ;;  %v447_v18 = vmul.f32 %v433_v42, %v423_v12  ;;  %v448_v19 = vmul.f32 %v437_v43, %v423_v12  ;;  %v449_v20 = vmul.f32 %v441_v44, %v423_v12  ;;  %673 = vst [vmem:[#allocation3 + $0x10] sm:$0xff] %v1727_v33 }
  0xe0   : > { %v586_v21 = vadd.f32 %v582_v13, %v551_v7  ;;  %v587_v22 = vadd.f32 %v583_v14, %v552_v8  ;;  %v588_v23 = vadd.f32 %v584_v15, %v553_v9  ;;  %v589_v24 = vadd.f32 %v585_v16, %v554_v10  ;;  %675 = vst.msk [vmem:[#allocation3 + $0x18] sm:$0xff] %vm654_vm0, %v1727_v33 }
  0xe1   : > { %v450_v25 = vadd.f32 %v446_v17, %v415_v3  ;;  %v451_v26 = vadd.f32 %v447_v18, %v416_v4  ;;  %v452_v27 = vadd.f32 %v448_v19, %v417_v5  ;;  %v453_v28 = vadd.f32 %v449_v20, %v418_v6 }
  0xe3   : > { %v591_v29 = vadd.f32 %v587_v22, %v451_v26  ;;  %v592_v30 = vadd.f32 %v588_v23, %v452_v27  ;;  %v593_v31 = vadd.f32 %v589_v24, %v453_v28  ;;  %v590_v32 = vadd.f32 %v586_v21, %v450_v25 }
  0xe5   : > { %v618_v34 = vadd.f32 %v607_v45, %v592_v30  ;;  %v619_v35 = vadd.f32 %v611_v46, %v593_v31  ;;  %v616_v36 = vadd.f32 %v599_v47, %v590_v32  ;;  %v617_v37 = vadd.f32 %v603_v48, %v591_v29 }
  0xe7   : > { %v622_v38 = vmax.f32 %v618_v34, 0.0  ;;  %v623_v39 = vmax.f32 %v619_v35, 0.0  ;;  %v620_v40 = vmax.f32 %v616_v36, 0.0  ;;  %v621_v41 = vmax.f32 %v617_v37, 0.0 }
  0xe9   : > { %v1436_v42 = vpack.c.bf16 %v623_v39, %v622_v38  ;;  %v1433_v43 = vpack.c.bf16 %v621_v41, %v620_v40  ;;  %v624_v44 = vpack.c.bf16 %v620_v40, %v620_v40  ;;  %v1435_v49 = vpack.c.bf16 %v622_v38, %v621_v41 }
  0xea   : > { %v1434_v45 = vpack.c.bf16 %v621_v41, %v621_v41 }
  0xeb   : > { %663 = vrot.lane.b32.xlu0 %v1436_v42, %s1728_s21  ;;  %633 = vrot.lane.b32.xlu1 %v1433_v43, %s1729_s25  ;;  %626 = vst.msk [vmem:[#allocation2] sm:$0xf] %vm625_vm1, %v624_v44 }
  0xef   : > { %651 = vrot.lane.b32.xlu1 %v1435_v49, %s1730_s16 }
  0xf3   : > { %642 = vrot.lane.b32.xlu1 %v1434_v45, %s1731_s30 }
 0x15d   : > { %v664_v46 = vpop.permute.xlu0 %663  ;;  %v634_v47 = vpop.permute.xlu1 %633 }
 0x15e   : > { %v665_v48 = vrot.slane %v664_v46, 4  ;;  %v635_v50 = vrot.slane %v634_v47, 4 }
 0x160   : > { %v667_v51 = vsel %vm666_vm2, %v664_v46, %v665_v48  ;;  %v637_v52 = vsel %vm636_vm3, %v634_v47, %v635_v50 }
 0x161   : > { %670 = vst.msk [vmem:[#allocation2 + $0x10] sm:$0xf] %vm625_vm1, %v667_v51  ;;  %640 = vst.msk [vmem:[#allocation2 + $0x4] sm:$0xf] %vm625_vm1, %v637_v52  ;;  %v652_v53 = vpop.permute.xlu1 %651 }
 0x162   : > { %v653_v54 = vrot.slane %v652_v53, 4 }
 0x164   : > { %v655_v55 = vsel %vm654_vm0, %v652_v53, %v653_v54 }
 0x165   : > { %658 = vst.msk [vmem:[#allocation2 + $0xc] sm:$0xf] %vm625_vm1, %v655_v55  ;;  %v643_v56 = vpop.permute.xlu1 %642 }
 0x166   : > { %646 = vst.msk [vmem:[#allocation2 + $0x8] sm:$0xf] %vm625_vm1, %v643_v56 }
 0x167 PF: > { %v1544_v57 = vld [vmem:[%s1907_s12 + $0x4] ss:$16 sps:$4 sm:$0xff]   ;;  %v1546_v58 = vld [vmem:[%s1907_s12 + $0xc] ss:$16 sps:$4 sm:$0xff]   ;;  %v1732_v59 = vmov 0   ;;  %s1376_s11 = sshll.u32 %s1809_s17, 2 }
 0x168   : > { %839 = vmatprep.mubr.bf16.mxu0 %v1732_v59  ;;  %880 = vmatprep.mubr.bf16.mxu1 %v1732_v59  ;;  %v1548_v60 = vld [vmem:[%s1907_s12] ss:$16 sps:$4 sm:$0xff]   ;;  %v1549_v61 = vld [vmem:[%s1907_s12 + $0x8] ss:$16 sps:$4 sm:$0xff]   ;;  %v1550_v62 = vld [vmem:[%s1907_s12 + $0x24] ss:$16 sps:$4 sm:$0xff]  }
 0x169   : > { %807 = vmatprep.subr.bf16.mxu0 %v1544_v57  ;;  %848 = vmatprep.subr.bf16.mxu1 %v1546_v58  ;;  %v1552_v63 = vld [vmem:[%s1907_s12 + $0x2c] ss:$16 sps:$4 sm:$0xff]   ;;  %v1554_v0 = vld [vmem:[%s1907_s12 + $0x20] ss:$16 sps:$4 sm:$0xff]   ;;  %v1555_v1 = vld [vmem:[%s1907_s12 + $0x28] ss:$16 sps:$4 sm:$0xff]  }
 0x16a   : > { %808 = vmatpush1.bf16.msra.mxu0 %v1548_v60  ;;  %849 = vmatpush1.bf16.msra.mxu1 %v1549_v61  ;;  %v1556_v2 = vld [vmem:[%s1907_s12 + $0x44] ss:$16 sps:$4 sm:$0xff]   ;;  %v1558_v3 = vld [vmem:[%s1907_s12 + $0x4c] ss:$16 sps:$4 sm:$0xff]   ;;  %v1560_v4 = vld [vmem:[%s1907_s12 + $0x40] ss:$16 sps:$4 sm:$0xff]  }
 0x16b   : > { %809 = vmatprep.subr.bf16.mxu0 %v1550_v62  ;;  %850 = vmatprep.subr.bf16.mxu1 %v1552_v63  ;;  %v1561_v5 = vld [vmem:[%s1907_s12 + $0x48] ss:$16 sps:$4 sm:$0xff]   ;;  %v1562_v6 = vld [vmem:[%s1907_s12 + $0x64] ss:$16 sps:$4 sm:$0xff]   ;;  %v1564_v7 = vld [vmem:[%s1907_s12 + $0x6c] ss:$16 sps:$4 sm:$0xff]  }
 0x16c   : > { %v1566_v8 = vld [vmem:[%s1907_s12 + $0x60] ss:$16 sps:$4 sm:$0xff]   ;;  %v1567_v9 = vld [vmem:[%s1907_s12 + $0x68] ss:$16 sps:$4 sm:$0xff]   ;;  %v1568_v10 = vld [vmem:[%s1907_s12 + $0x84] ss:$16 sps:$4 sm:$0xff]  }
 0x16d   : > { %v1570_v11 = vld [vmem:[%s1907_s12 + $0x8c] ss:$16 sps:$4 sm:$0xff]   ;;  %v1572_v12 = vld [vmem:[%s1907_s12 + $0x80] ss:$16 sps:$4 sm:$0xff]   ;;  %v1573_v13 = vld [vmem:[%s1907_s12 + $0x88] ss:$16 sps:$4 sm:$0xff]  }
 0x16e   : > { %810 = vmatpush1.bf16.msra.mxu0 %v1554_v0  ;;  %851 = vmatpush1.bf16.msra.mxu1 %v1555_v1  ;;  %s681_s22 = scalar_lea.vmem [#allocation2], %s1376_s11  ;;  %vm803_vm4 = vcmask 654336   ;;  %v676_v15 = vld [vmem:[#allocation3] sm:$0xff]  ;;  %v678_v16 = vld [vmem:[#allocation3 + $0x10] sm:$0xff]  ;;  %v677_v17 = vld [vmem:[#allocation3 + $0x8] sm:$0xff]  ;;  %vm896_vm5 = vcmask 130048  }
 0x16f   : > { %811 = vmatprep.subr.bf16.mxu0 %v1556_v2  ;;  %852 = vmatprep.subr.bf16.mxu1 %v1558_v3  ;;  %v682_v14 = vld [vmem:[%s681_s22] sm:$0xf]  ;;  %p1399_p9 = scmp.ne.s32.totalorder %s1809_s17, 4 }
 0x170   : > { %v679_v18 = vld [vmem:[#allocation3 + $0x18] sm:$0xff]  ;;  %v1574_v31 = vld [vmem:[#allocation7 + $0x40] sm:$0xff] (!%p1399_p9)   ;;  %v1733_v32 = vmov (!%p1399_p9), 0   ;;  %v1577_v35 = vld [vmem:[#allocation7 + $0x48] sm:$0xff] (!%p1399_p9)   ;;  %v908_v42 = vlaneseq (!%p1399_p9) }
 0x171   : > { %v1575_v33 = vld [vmem:[#allocation7 + $0x80] sm:$0xff] (!%p1399_p9)   ;;  %v1578_v36 = vld [vmem:[#allocation7 + $0x88] sm:$0xff] (!%p1399_p9)   ;;  %v1580_v38 = vld [vmem:[#allocation7 + $0x50] sm:$0xff] (!%p1399_p9)  }
 0x172   : > { %812 = vmatpush1.bf16.msra.mxu0 %v1560_v4  ;;  %853 = vmatpush1.bf16.msra.mxu1 %v1561_v5  ;;  %v1576_v34 = vld [vmem:[#allocation7] sm:$0xff] (!%p1399_p9)   ;;  %v1579_v37 = vld [vmem:[#allocation7 + $0x8] sm:$0xff] (!%p1399_p9)   ;;  %v1581_v39 = vld [vmem:[#allocation7 + $0x90] sm:$0xff] (!%p1399_p9)   ;;  %v2023_v45 = vshrl.u32 (!%p1399_p9), %v908_v42, 7 }
 0x173   : > { %813 = vmatprep.subr.bf16.mxu0 %v1562_v6  ;;  %854 = vmatprep.subr.bf16.mxu1 %v1564_v7  ;;  %v1582_v40 = vld [vmem:[#allocation7 + $0x10] sm:$0xff] (!%p1399_p9)   ;;  %v1583_v41 = vld [vmem:[#allocation7 + $0x58] sm:$0xff] (!%p1399_p9)   ;;  %v1586_v49 = vld [vmem:[#allocation7 + $0x60] sm:$0xff] (!%p1399_p9)  }
 0x174   : > { %v1584_v43 = vld [vmem:[#allocation7 + $0x98] sm:$0xff] (!%p1399_p9)   ;;  %v1587_v46 = vld [vmem:[#allocation7 + $0xa0] sm:$0xff] (!%p1399_p9)   ;;  %v1589_v48 = vld [vmem:[#allocation7 + $0x68] sm:$0xff] (!%p1399_p9)   ;;  %v914_v50 = vsub.s32 (!%p1399_p9), 1, %v2023_v45  ;;  %v910_v52 = vsub.s32 (!%p1399_p9), 0, %v2023_v45  ;;  %v922_v54 = vsub.s32 (!%p1399_p9), 3, %v2023_v45 }
 0x175   : > { %v1585_v44 = vld [vmem:[#allocation7 + $0x18] sm:$0xff] (!%p1399_p9)   ;;  %v1588_v47 = vld [vmem:[#allocation7 + $0x20] sm:$0xff] (!%p1399_p9)   ;;  %v1590_v51 = vld [vmem:[#allocation7 + $0xa8] sm:$0xff] (!%p1399_p9)   ;;  %v918_v56 = vsub.s32 (!%p1399_p9), 2, %v2023_v45  ;;  %vm1240_vm6 = vcmp.lt.s32.totalorder (!%p1399_p9), %v2023_v45, 2 }
 0x176   : > { %814 = vmatpush1.bf16.msra.mxu0 %v1566_v8  ;;  %855 = vmatpush1.bf16.msra.mxu1 %v1567_v9  ;;  %v1591_v53 = vld [vmem:[#allocation7 + $0x28] sm:$0xff] (!%p1399_p9)   ;;  %v1592_v55 = vld [vmem:[#allocation7 + $0x70] sm:$0xff] (!%p1399_p9)   ;;  %v906_v60 = vld [vmem:[%s2087_s6] sm:$0xf] (!%p1399_p9) }
 0x177   : > { %815 = vmatprep.subr.bf16.mxu0 %v1568_v10  ;;  %856 = vmatprep.subr.bf16.mxu1 %v1570_v11  ;;  %v1593_v57 = vld [vmem:[#allocation7 + $0xb0] sm:$0xff] (!%p1399_p9)   ;;  %v1595_v62 = vld [vmem:[#allocation7 + $0x78] sm:$0xff] (!%p1399_p9)   ;;  %v915_v63 = vrot.slane (!%p1399_p9), %v906_v60, %v914_v50  ;;  %v911_v0 = vrot.slane (!%p1399_p9), %v906_v60, %v910_v52  ;;  %v923_v1 = vrot.slane (!%p1399_p9), %v906_v60, %v922_v54 }
 0x178   : > { %v1594_v58 = vld [vmem:[#allocation7 + $0x30] sm:$0xff] (!%p1399_p9)   ;;  %v919_v2 = vrot.slane (!%p1399_p9), %v906_v60, %v918_v56  ;;  %v1596_v5 = vld [vmem:[#allocation7 + $0xb8] sm:$0xff] (!%p1399_p9)  }
 0x179   : > { %v1597_v10 = vld [vmem:[#allocation7 + $0x38] sm:$0xff] (!%p1399_p9)  }
 0x17a   : > { %816 = vmatpush1.bf16.msra.mxu0 %v1572_v12  ;;  %857 = vmatpush1.bf16.msra.mxu1 %v1573_v13 }
 0x17b   : > { %1190 = vmatprep.subr.bf16.mxu1 (!%p1399_p9), %v1733_v32  ;;  %1438 = vmatprep.subr.bf16.mxu0 (!%p1399_p9), %v1574_v31 }
 0x17d   : > { %1397 = vmatmul.mubr.msk.bf16.vlgmr.msra.gmra.mrb[0].mxu0 %vm803_vm4, %v682_v14  ;;  %1398 = vmatmul.mubr.msk.bf16.vlgmr.msra.gmra.mrb[0].mxu1 %vm803_vm4, %v682_v14 }
 0x17e   : > { %1191 = vmatpush1.bf16.msra.mxu1 (!%p1399_p9), %v1575_v33  ;;  %1439 = vmatpush3.bf16.msra.mxu0 (!%p1399_p9), %v1576_v34 }
 0x17f   : > { %1192 = vmatprep.subr.bf16.mxu1 (!%p1399_p9), %v1733_v32  ;;  %1440 = vmatprep.subr.bf16.mxu0 (!%p1399_p9), %v1577_v35 }
 0x182   : > { %1193 = vmatpush1.bf16.msra.mxu1 (!%p1399_p9), %v1578_v36  ;;  %1441 = vmatpush3.bf16.msra.mxu0 (!%p1399_p9), %v1579_v37  ;;  %v1239_v36 = vand.u32 (!%p1399_p9), 127, %v908_v42 }
 0x183   : > { %1194 = vmatprep.subr.bf16.mxu1 (!%p1399_p9), %v1733_v32  ;;  %1442 = vmatprep.subr.bf16.mxu0 (!%p1399_p9), %v1580_v38 }
 0x184   : > { %vm1241_vm7 = vcmp.lt.s32.totalorder (!%p1399_p9), %v1239_v36, 9 }
 0x185   : > { %vm2043_vm8 = vmand (!%p1399_p9), %vm1240_vm6, %vm1241_vm7 }
 0x186   : > { %1195 = vmatpush1.bf16.msra.mxu1 (!%p1399_p9), %v1581_v39  ;;  %1443 = vmatpush3.bf16.msra.mxu0 (!%p1399_p9), %v1582_v40 }
 0x187   : > { %1196 = vmatprep.subr.bf16.mxu1 (!%p1399_p9), %v1733_v32  ;;  %1444 = vmatprep.subr.bf16.mxu0 (!%p1399_p9), %v1583_v41 }
 0x18a   : > { %1197 = vmatpush1.bf16.msra.mxu1 (!%p1399_p9), %v1584_v43  ;;  %1445 = vmatpush3.bf16.msra.mxu0 (!%p1399_p9), %v1585_v44 }
 0x18b   : > { %1198 = vmatprep.subr.bf16.mxu1 (!%p1399_p9), %v1733_v32  ;;  %1446 = vmatprep.subr.bf16.mxu0 (!%p1399_p9), %v1586_v49 }
 0x18e   : > { %1199 = vmatpush1.bf16.msra.mxu1 (!%p1399_p9), %v1587_v46  ;;  %1447 = vmatpush3.bf16.msra.mxu0 (!%p1399_p9), %v1588_v47  ;;  %v1253_v47 = vmul.u32 (!%p1399_p9), 9, %v2023_v45 }
 0x18f   : > { %1200 = vmatprep.subr.bf16.mxu1 (!%p1399_p9), %v1733_v32  ;;  %1448 = vmatprep.subr.bf16.mxu0 (!%p1399_p9), %v1589_v48 }
 0x190   : > { %v1254_v48 = vadd.s32 (!%p1399_p9), %v1253_v47, %v1239_v36 }
 0x192   : > { %1201 = vmatpush1.bf16.msra.mxu1 (!%p1399_p9), %v1590_v51  ;;  %1449 = vmatpush3.bf16.msra.mxu0 (!%p1399_p9), %v1591_v53 }
 0x193   : > { %1202 = vmatprep.subr.bf16.mxu1 (!%p1399_p9), %v1733_v32  ;;  %1450 = vmatprep.subr.bf16.mxu0 (!%p1399_p9), %v1592_v55 }
 0x196   : > { %1203 = vmatpush1.bf16.msra.mxu1 (!%p1399_p9), %v1593_v57  ;;  %1451 = vmatpush3.bf16.msra.mxu0 (!%p1399_p9), %v1594_v58 }
 0x197   : > { %1204 = vmatprep.subr.bf16.mxu1 (!%p1399_p9), %v1733_v32  ;;  %1452 = vmatprep.subr.bf16.mxu0 (!%p1399_p9), %v1595_v62 }
 0x19a   : > { %1205 = vmatpush1.bf16.msra.mxu1 (!%p1399_p9), %v1596_v5  ;;  %1453 = vmatpush3.bf16.msra.mxu0 (!%p1399_p9), %v1597_v10 }
 0x19b   : > { %1206 = vmatprep.subr.bf16.mxu1 (!%p1399_p9), %v1733_v32 }
 0x24e   : > { %901 = sbr.rel (%p1399_p9) target bundleno = 1424 (0x590), region = 72 }
 0x250   : > { %v841_v19 = vpop.f32.mrb[0].mxu0  ;;  %v882_v20 = vpop.f32.mrb[0].mxu1 }
 0x251   : > { %v889_v21 = vadd.f32 %v841_v19, %v676_v15  ;;  %v891_v22 = vadd.f32 %v882_v20, %v678_v16  ;;  %v843_v23 = vpop.f32.mrb[1].mxu0  ;;  %v884_v24 = vpop.f32.mrb[1].mxu1 }
 0x252   : > { %v890_v25 = vadd.f32 %v843_v23, %v677_v17  ;;  %v892_v26 = vadd.f32 %v884_v24, %v679_v18  ;;  %v845_v27 = vpop.f32.mrb[2].mxu0  ;;  %v886_v28 = vpop.f32.mrb[2].mxu1  ;;  %v1598_v17 = vld [vmem:[#allocation7 + $0xc0] sm:$0xff] (!%p1399_p9)  }
 0x253   : > { %893 = vst [vmem:[#allocation3] sm:$0xff] %v889_v21  ;;  %895 = vst [vmem:[#allocation3 + $0x10] sm:$0xff] %v891_v22  ;;  %v846_v29 = vpop.f32.mrb[3].mxu0  ;;  %v887_v30 = vpop.f32.mrb[3].mxu1  ;;  %1207 = vmatpush1.bf16.msra.mxu1 (!%p1399_p9), %v1598_v17  ;;  %v1400_v22 = vld [vmem:[%s2089_s8] ss:$0 sm:$0xff] (!%p1399_p9) }
 0x254   : > { %894 = vst [vmem:[#allocation3 + $0x8] sm:$0xff] %v890_v25  ;;  %897 = vst.msk [vmem:[#allocation3 + $0x18] sm:$0xff] %vm896_vm5, %v892_v26 }
 0x25a   : > { %v902_v61 = vld [vmem:[#allocation3] sm:$0xff]  ;;  %v904_v4 = vld [vmem:[#allocation3 + $0x10] sm:$0xff] }
 0x25b   : > { %v903_v59 = vld [vmem:[#allocation3 + $0x8] sm:$0xff]  ;;  %v905_v3 = vld [vmem:[#allocation3 + $0x18] sm:$0xff]  ;;  %v928_v7 = vadd.f32 %v911_v0, %v902_v61  ;;  %v930_v9 = vadd.f32 %v919_v2, %v904_v4 }
 0x25c   : > { %v929_v6 = vadd.f32 %v915_v63, %v903_v59  ;;  %v931_v8 = vadd.f32 %v923_v1, %v905_v3 }
 0x25d   : > { %v932_v12 = vmax.f32 %v928_v7, 0.0  ;;  %v934_v14 = vmax.f32 %v930_v9, 0.0 }
 0x25e   : > { %v933_v11 = vmax.f32 %v929_v6, 0.0  ;;  %v935_v13 = vmax.f32 %v931_v8, 0.0 }
 0x25f   : > { %v936_v16 = vpack.c.bf16 %v932_v12, %v932_v12  ;;  %v938_v19 = vpack.c.bf16 %v934_v14, %v934_v14 }
 0x260   : > { %v937_v15 = vpack.c.bf16 %v933_v11, %v933_v11  ;;  %v939_v18 = vpack.c.bf16 %v935_v13, %v935_v13 }
 0x262   : > { %1182 = vmatprep.mubr.bf16.mxu0 %v937_v15  ;;  %1426 = vmatprep.mubr.msk.bf16.mxu1 %vm896_vm5, %v939_v18 }
 0x263   : > { %1183 = vmatmul.mubr.bf16.vlgmr.msra.gmra.mrb[0].mxu0 %v936_v16  ;;  %1223 = vmatmul.mubr.bf16.vlgmr.msra.gmra.mrb[0].mxu1 %v938_v19 }
 0x336   : > { %v1454_v20 = vpop.f32.mrb[0].mxu0  ;;  %v1224_v26 = vpop.f32.mrb[0].mxu1 }
 0x337   : > { %v1455_v21 = vpop.f32.mrb[1].mxu0  ;;  %v1226_v28 = vpop.f32.mrb[1].mxu1 }
 0x338   : > { %v1456_v23 = vadd.f32 %v1455_v21, %v1454_v20  ;;  %v1457_v24 = vpop.f32.mrb[2].mxu0  ;;  %v1227_v29 = vpop.f32.mrb[2].mxu1 }
 0x339   : > { %v1458_v25 = vpop.f32.mrb[3].mxu0  ;;  %v1228_v31 = vpop.f32.mrb[3].mxu1 }
 0x33a   : > { %v1185_v27 = vadd.f32 %v1456_v23, %v1400_v22 }
 0x33c   : > { %v1225_v30 = vadd.f32 %v1224_v26, %v1185_v27 }
 0x33e   : > { %v1230_v32 = vsub.f32 0.0, %v1225_v30 }
 0x340   : > { %v1231_v33 = vmul.f32 1.442695, %v1230_v32 }
 0x342   : > { %1599 = vpow2.f32 %v1231_v33 }
 0x34c   : > { %v1600_v34 = vpop.eup %1599 }
 0x34d   : > { %v1233_v35 = vadd.f32 1.0, %v1600_v34 }
 0x34f   : > { %1601 = vrcp.f32 %v1233_v35 }
 0x359   : > { %v1602_v38 = vpop.eup %1601 }
 0x35a   : > { %1235 = vst [vmem:[%s2090_s9] sm:$0xff] %v1602_v38  ;;  %v1243_v39 = vsel %vm2043_vm8, %v1602_v38, -1.0 }
 0x35b   : > { %1244 = vmax.xlane.f32.xlu0 %v1243_v39 }
 0x3e8   : > { %v1245_v40 = vpop.xlane.xlu0 %1244 }
 0x3e9   : > { %v1246_v41 = vrot.slane %v1245_v40, 4 }
 0x3eb   : > { %v1247_v43 = vmax.f32 %v1245_v40, %v1246_v41 }
 0x3ed   : > { %v1248_v42 = vrot.slane %v1247_v43, 2 }
 0x3ef   : > { %v1249_v44 = vmax.f32 %v1247_v43, %v1248_v42 }
 0x3f1   : > { %v1250_v49 = vrot.slane %v1249_v44, 1 }
 0x3f3   : > { %v1251_v46 = vmax.f32 %v1249_v44, %v1250_v49 }
 0x3f5   : > { %1462 = vpush %v1251_v46 }
 0x426   : > { %s1463_s28 = spop %1462 }
 0x427   : > { %v1255_v50 = vstv %s1463_s28 }
 0x428   : > { %vm1256_vm9 = vcmp.eq.f32.partialorder %v1243_v39, %v1255_v50 }
 0x429   : > { %vm1257_vm10 = vmand %vm1256_vm9, %vm2043_vm8 }
 0x42a   : > { %v1258_v51 = vsel %vm1257_vm10, %v1254_v48, 1073741824 }
 0x42b   : > { %v1260_v52 = vshra.s32 %v1258_v51, 16  ;;  %v1259_v54 = vand.u32 65535, %v1258_v51 }
 0x42d   : > { %v1262_v53 = vcvt.s32.f32 %v1260_v52  ;;  %v1261_v56 = vcvt.s32.f32 %v1259_v54 }
 0x42f   : > { %1263 = vmin.xlane.f32.xlu0 %v1262_v53 }
 0x4bc   : > { %v1264_v55 = vpop.xlane.xlu0 %1263 }
 0x4bd   : > { %vm1265_vm11 = vcmp.eq.f32.partialorder %v1262_v53, %v1264_v55  ;;  %v1270_v58 = vcvt.f32.s32 %v1264_v55 }
 0x4be   : > { %v1266_v57 = vsel %vm1265_vm11, %v1261_v56, inf }
 0x4bf   : > { %1267 = vmin.xlane.f32.xlu1 %v1266_v57  ;;  %v1271_v45 = vshll.u32 %v1270_v58, 16 }
 0x54c   : > { %v1268_v59 = vpop.xlane.xlu1 %1267 }
 0x54d   : > { %v1269_v60 = vcvt.f32.s32 %v1268_v59 }
 0x54f   : > { %v1272_v61 = vadd.s32 %v1271_v45, %v1269_v60 }
 0x551   : > { %v1273_v62 = vrot.slane %v1272_v61, 4 }
 0x553   : > { %vm1274_vm12 = vcmp.lt.s32.totalorder %v1272_v61, %v1273_v62 }
 0x554   : > { %v1275_v63 = vsel %vm1274_vm12, %v1272_v61, %v1273_v62 }
 0x555   : > { %v1276_v0 = vrot.slane %v1275_v63, 2 }
 0x557   : > { %vm1277_vm13 = vcmp.lt.s32.totalorder %v1275_v63, %v1276_v0 }
 0x558   : > { %v1278_v1 = vsel %vm1277_vm13, %v1275_v63, %v1276_v0 }
 0x559   : > { %v1279_v2 = vrot.slane %v1278_v1, 1 }
 0x55b   : > { %vm1280_vm14 = vcmp.lt.s32.totalorder %v1278_v1, %v1279_v2 }
 0x55c   : > { %v1281_v3 = vsel %vm1280_vm14, %v1278_v1, %v1279_v2 }
 0x55d   : > { %1464 = vpush %v1281_v3 }
 0x58e   : > { %s1465_s19 = spop %1464 }
 0x58f   : > { %1284 = sst [smem:[#allocation9]] %s1465_s19 }
 0x590 PF: > { %p1487_p10 = scmp.eq.s32.totalorder %s1809_s17, 4  ;;  %s1661_s21 = scalar_lea.hbm %s2091_s10, 16 }
 0x591   : > { %p1662_p1 = scmp.ne.s32.totalorder %s2091_s10, %s1661_s21  ;;  %p1667_p8 = scmp.lt.u32.totalorder %s1661_s21, %s2091_s10 }
 0x593   : > { %p1663_p4 = pnand %p1662_p1, %p1487_p10 }
 0x595   : > { %p1664_p5 = pneg %p1663_p4 }
 0x597   : > { %p1669_p12 = pnand %p1667_p8, %p1664_p5 }
 0x599   : > { %1672 = shalt.err (!%p1669_p12)
}
 0x59a   : > { %s1734_s22 = smov [#allocation9]  }
 0x59b   : > { %1473 = dma.smem_to_hbm (%p1487_p10), %s1734_s22, 16, %s2091_s10, [#allocation6]  }
 0x59c   : > { %1698 = dma.done.wait (%p1487_p10), [#allocation6], 16  }
 0x59d   : > { %1700 = vsyncadd (%p1487_p10), [#allocation6], 4294967280 }
 0x59e   : > { %1304 = sfence }
 0x59f PF: > { %s2109_s16 = sld [smem:[#allocation13_spill]]  ;;  %s2110_s13 = smov %s1707_s14 }
 0x5a0   : > { %s2111_s14 = smov %s1711_s15  ;;  %s2112_s15 = smov %s1861_s29 }
 0x5a5   : > { %p23_p0 = scmp.ge.s32.totalorder %s2109_s16, 7  }
 0x5a7   :  { %25 = sbr.rel (!%p23_p0) target bundleno = 5 (0x5), region = 123 }
 0x5ae   :  { %1310 = vsyncpa [#allocation5], 1 }
 0x5af   :  { %1312 = vsyncpa [#allocation5 + $0x1], 1 }
 0x5b0   :  { %1313 = vsyncpa [#allocation8], 1 }
 0x5b1   :  { %1314 = vsyncpa [#allocation6], 1 }
 0x5b2   :  { %1316 = vsyncpa [#allocation6 + $0x1], 1 }

</bundles_post_ra>
